<compile_context>
chip_gen: v7x
topology: tpu7x:2x2x1
jax: 0.10.0
libtpu: 0.0.40
codegen_flags: <defaults>
</compile_context>

<pallas_src>
import jax
import jax.numpy as jnp
from jax.experimental import pallas as pl
from jax.experimental.pallas import tpu as pltpu


def _round_up(v, m):
    return ((v + m - 1) // m) * m


def _patch_embed_kernel(x_ref, w_ref, b_ref, o_ref):
    # x_ref: (tm, K), w_ref: (K, te), b_ref: (1, te), o_ref: (tm, te)
    acc = jnp.dot(x_ref[...], w_ref[...], preferred_element_type=jnp.float32)
    o_ref[...] = (acc + b_ref[...].astype(jnp.float32)).astype(o_ref.dtype)


def patch_embed(x, weight, bias, patch_size=(2, 2), *, tm=1024, te=1536,
                out_dtype=None):
    """x: (B, C, H, W) NCHW (like PyTorch). weight: (E, C, ph, pw). bias: (E,).

    Returns (B, N, E) with N = (H//ph) * (W//pw).
    """
    B, C, H, W = x.shape
    E = weight.shape[0]
    ph, pw = patch_size
    assert H % ph == 0 and W % pw == 0
    gh, gw = H // ph, W // pw
    N = gh * gw
    K = C * ph * pw
    M = B * N
    if out_dtype is None:
        out_dtype = x.dtype

    # --- glue: patchify (plain JAX) ---
    # (B, C, gh, ph, gw, pw) -> (B, gh, gw, C, ph, pw) -> (B*N, K)
    xp = x.reshape(B, C, gh, ph, gw, pw)
    xp = jnp.transpose(xp, (0, 2, 4, 1, 3, 5)).reshape(M, K)

    # conv weight (E, C, ph, pw) -> (K, E): columns match patch-vector order.
    w2d = weight.reshape(E, K).T
    b2d = bias.reshape(1, E)

    in_item = xp.dtype.itemsize
    w_item = w2d.dtype.itemsize
    out_item = jnp.dtype(out_dtype).itemsize

    # --- E tiling: one full-extent block if it fits, else lane-dense tiles ---
    if E <= te:
        te_eff = E            # full-extent block (allowed even if E < 128)
        e_pad = E
    else:
        n_e = pl.cdiv(E, te)
        te_eff = _round_up(pl.cdiv(E, n_e), 128)   # minimize padding waste
        e_pad = _round_up(E, te_eff)

    # --- M tiling: clamp requested tile by a double-buffered VMEM budget ---
    budget = 30 << 20
    fixed = 2 * (K * te_eff * w_item + te_eff * w_item)       # weight + bias
    per_row = 2 * (K * in_item + te_eff * out_item)           # x row + out row
    tm_cap = max((budget - fixed) // per_row, 8)
    tm_cap = (tm_cap // 8) * 8
    tm_eff = min(_round_up(tm, 8), _round_up(M, 8), tm_cap)
    m_pad = _round_up(M, tm_eff)

    if m_pad != M:
        xp = jnp.pad(xp, ((0, m_pad - M), (0, 0)))
    if e_pad != E:
        w2d = jnp.pad(w2d, ((0, 0), (0, e_pad - E)))
        b2d = jnp.pad(b2d, ((0, 0), (0, e_pad - E)))

    grid = (m_pad // tm_eff, e_pad // te_eff)

    # --- VMEM budget (double-buffered tiles) + headroom, clamped for v7x ---
    vmem_need = fixed + per_row * tm_eff
    vmem_limit = int(min(max(vmem_need + max(vmem_need // 4, 4 << 20),
                             16 << 20), 48 << 20))

    cost = pl.CostEstimate(
        flops=2 * M * K * E,
        transcendentals=0,
        bytes_accessed=M * K * in_item + K * E * w_item + M * E * out_item,
    )

    out = pl.pallas_call(
        _patch_embed_kernel,
        out_shape=jax.ShapeDtypeStruct((m_pad, e_pad), out_dtype),
        grid_spec=pltpu.PrefetchScalarGridSpec(
            num_scalar_prefetch=0,
            grid=grid,
            in_specs=[
                pl.BlockSpec((tm_eff, K), lambda i, j: (i, 0)),
                pl.BlockSpec((K, te_eff), lambda i, j: (0, j)),
                pl.BlockSpec((1, te_eff), lambda i, j: (0, j)),
            ],
            out_specs=pl.BlockSpec((tm_eff, te_eff), lambda i, j: (i, j)),
        ),
        compiler_params=pltpu.CompilerParams(
            dimension_semantics=("parallel", "parallel"),
            vmem_limit_bytes=vmem_limit,
        ),
        cost_estimate=cost,
    )(xp, w2d, b2d)

    if m_pad != M or e_pad != E:
        out = out[:M, :E]
    return out.reshape(B, N, E)


if __name__ == "__main__":
    # Small shapes consistent with the module: batch=2, in_chans=4,
    # spatial 16x16, patch 2x2 -> N=64 tokens, embed_dim=32.
    B, C, H, W = 2, 4, 16, 16
    patch = (2, 2)
    E = 32

    key = jax.random.PRNGKey(0)
    kx, kw, kb = jax.random.split(key, 3)
    x = jax.random.normal(kx, (B, C, H, W), dtype=jnp.float32)
    weight = jax.random.normal(kw, (E, C, patch[0], patch[1]), dtype=jnp.float32) * 0.02
    bias = jax.random.normal(kb, (E,), dtype=jnp.float32) * 0.02

    out = patch_embed(x, weight, bias, patch)
    out = jax.block_until_ready(out)

    gh, gw = H // patch[0], W // patch[1]
    N = gh * gw
    assert out.shape == (B, N, E)

    # Reference 1: strided conv (exactly the PyTorch forward), then flatten+T.
    ref_conv = jax.lax.conv_general_dilated(
        x, weight, window_strides=patch, padding="VALID",
        dimension_numbers=("NCHW", "OIHW", "NCHW"))
    ref_conv = ref_conv.reshape(B, E, N).transpose(0, 2, 1) + bias

    # Reference 2: the same patchify + GEMM in plain JAX.
    xp = x.reshape(B, C, gh, patch[0], gw, patch[1])
    xp = jnp.transpose(xp, (0, 2, 4, 1, 3, 5)).reshape(B, N, -1)
    ref_gemm = xp @ weight.reshape(E, -1).T + bias

    assert jnp.allclose(out, ref_gemm, atol=1e-5, rtol=1e-5)
    assert jnp.allclose(out, ref_conv, atol=1e-4, rtol=1e-4)

    print("KERNEL_OK")
</pallas_src>

<mosaic_0001>
module attributes {stable_mosaic.version = 11 : i64} {
  func.func @_patch_embed_kernel(%arg0: i32, %arg1: i32, %arg2: memref<128x16xf32, #tpu.memory_space<vmem>>, %arg3: memref<16x32xf32, #tpu.memory_space<vmem>>, %arg4: memref<1x32xf32, #tpu.memory_space<vmem>>, %arg5: memref<128x32xf32, #tpu.memory_space<vmem>>) attributes {dimension_semantics = [#tpu.dimension_semantics<parallel>, #tpu.dimension_semantics<parallel>], iteration_bounds = array<i64: 1, 1>, scalar_prefetch = 0 : i64, scratch_operands = 0 : i64, tpu.core_type = #tpu.core_type<tc>, window_params = [{transform_indices = @transform_0, window_bounds = array<i64: 128, 16>}, {transform_indices = @transform_1, window_bounds = array<i64: 16, 32>}, {transform_indices = @transform_2, window_bounds = array<i64: 1, 32>}, {transform_indices = @transform_3, window_bounds = array<i64: 128, 32>}]} {
    %c0 = arith.constant 0 : index
    %c0_0 = arith.constant 0 : index
    %0 = vector.load %arg2[%c0, %c0_0] : memref<128x16xf32, #tpu.memory_space<vmem>>, vector<128x16xf32>
    %c0_1 = arith.constant 0 : index
    %c0_2 = arith.constant 0 : index
    %1 = vector.load %arg3[%c0_1, %c0_2] : memref<16x32xf32, #tpu.memory_space<vmem>>, vector<16x32xf32>
    %cst = arith.constant dense<0.000000e+00> : vector<128x32xf32>
    %2 = tpu.matmul %0, %1, %cst {dimension_numbers = #tpu.dot_dimension_numbers<[1], [0], [0], [1], [0, 0, 1, 1], [], []>} : vector<128x16xf32>, vector<16x32xf32>, vector<128x32xf32> -> vector<128x32xf32>
    %c0_3 = arith.constant 0 : index
    %c0_4 = arith.constant 0 : index
    %3 = vector.load %arg4[%c0_3, %c0_4] : memref<1x32xf32, #tpu.memory_space<vmem>>, vector<1x32xf32>
    %4 = vector.broadcast %3 : vector<1x32xf32> to vector<128x32xf32>
    %5 = arith.addf %2, %4 : vector<128x32xf32>
    %c0_5 = arith.constant 0 : index
    %c0_6 = arith.constant 0 : index
    %6 = vector.load %arg5[%c0_5, %c0_6] : memref<128x32xf32, #tpu.memory_space<vmem>>, vector<128x32xf32>
    tpu.vector_store %arg5[%c0_5, %c0_6], %5 {strides = array<i32>} : memref<128x32xf32, #tpu.memory_space<vmem>>, vector<128x32xf32>,
    return
  }
  func.func @transform_0(%arg0: i32, %arg1: i32) -> (i32, i32) {
    %c0_i32 = arith.constant 0 : i32
    %c0_i32_0 = arith.constant 0 : i32
    return %arg0, %c0_i32 : i32, i32
  }
  func.func @transform_1(%arg0: i32, %arg1: i32) -> (i32, i32) {
    %c0_i32 = arith.constant 0 : i32
    %c0_i32_0 = arith.constant 0 : i32
    return %c0_i32, %arg1 : i32, i32
  }
  func.func @transform_2(%arg0: i32, %arg1: i32) -> (i32, i32) {
    %c0_i32 = arith.constant 0 : i32
    %c0_i32_0 = arith.constant 0 : i32
    return %c0_i32, %arg1 : i32, i32
  }
  func.func @transform_3(%arg0: i32, %arg1: i32) -> (i32, i32) {
    %c0_i32 = arith.constant 0 : i32
    return %arg0, %arg1 : i32, i32
  }
}

</mosaic_0001>

<bundles_post_ra>
// kernel: tpu_custom_call.1
= control target key start
LH: loop header
LB: loop body
LE: loop exit
PB: predicated region body
PF: predicated region fallthrough
CT: control target
= control target key end

     0   :  { %vm39_vm0 = vcmask 130048   ;;  %vm233_vm1 = vcmask 261120   ;;  %s480_s1 = inlined_call_operand.vmem [shape: f32[16,32], index: 1, kind: input, shape index: {}]   ;;  %s481_s0 = inlined_call_operand.vmem [shape: f32[128,16], index: 0, kind: input, shape index: {}]   ;;  %s482_s2 = inlined_call_operand.vmem [shape: f32[1,32], index: 2, kind: input, shape index: {}]   ;;  %s483_s3 = inlined_call_operand.vmem [shape: f32[128,32], index: 3, kind: output, shape index: {}]  }
   0x1   :  { %v30_v0 = vld [vmem:[%s480_s1] sm:$0xff]  ;;  %v31_v1 = vld [vmem:[%s480_s1 + $0x8] sm:$0xff]  ;;  %v16_v7 = vld [vmem:[%s481_s0 + $0x10] sm:$0xff] }
   0x2   :  { %v14_v2 = vld [vmem:[%s481_s0] sm:$0xff]  ;;  %v317_v3 = vpack.c.bf16 %v31_v1, %v30_v0  ;;  %v15_v5 = vld [vmem:[%s481_s0 + $0x8] sm:$0xff]  ;;  %v24_v8 = vld [vmem:[%s481_s0 + $0x50] sm:$0xff] }
   0x3   :  { %293 = vmatprep.mubr.msk.f32.mxu0 %vm39_vm0, %v14_v2  ;;  %v22_v4 = vld [vmem:[%s481_s0 + $0x40] sm:$0xff]  ;;  %v23_v6 = vld [vmem:[%s481_s0 + $0x48] sm:$0xff]  ;;  %v17_v9 = vld [vmem:[%s481_s0 + $0x18] sm:$0xff] }
   0x4   :  { %305 = vmatprep.mubr.msk.f32.mxu1 %vm39_vm0, %v22_v4  ;;  %318 = vmatprep.subr.bf16.mxu0 %v317_v3  ;;  %v25_v10 = vld [vmem:[%s481_s0 + $0x58] sm:$0xff]  ;;  %v18_v11 = vld [vmem:[%s481_s0 + $0x20] sm:$0xff]  ;;  %v19_v13 = vld [vmem:[%s481_s0 + $0x28] sm:$0xff] }
   0x5   :  { %321 = vmatprep.subr.bf16.mxu1 %v317_v3  ;;  %320 = vmatpush3.bf16.msra.mxu0 %v317_v3  ;;  %v26_v12 = vld [vmem:[%s481_s0 + $0x60] sm:$0xff]  ;;  %v27_v14 = vld [vmem:[%s481_s0 + $0x68] sm:$0xff]  ;;  %v20_v15 = vld [vmem:[%s481_s0 + $0x30] sm:$0xff] }
   0x6   :  { %322 = vmatpush3.bf16.msra.mxu1 %v317_v3  ;;  %v28_v16 = vld [vmem:[%s481_s0 + $0x70] sm:$0xff]  ;;  %v21_v17 = vld [vmem:[%s481_s0 + $0x38] sm:$0xff]  ;;  %v254_v19 = vld [vmem:[%s482_s2] ss:$0 sm:$0xff] }
   0x7   :  { %v29_v18 = vld [vmem:[%s481_s0 + $0x78] sm:$0xff] }
   0x8   :  { %294 = vmatmul.mubr.msk.f32.vlgmr.msra.gmra.mrb[0].mxu0 %vm39_vm0, %v15_v5 }
   0x9   :  { %306 = vmatmul.mubr.msk.f32.vlgmr.msra.gmra.mrb[0].mxu1 %vm39_vm0, %v23_v6  ;;  %296 = vmatprep.mubr.msk.f32.mxu0 %vm39_vm0, %v16_v7 }
   0xa   :  { %308 = vmatprep.mubr.msk.f32.mxu1 %vm39_vm0, %v24_v8 }
   0xc   :  { %297 = vmatmul.mubr.msk.f32.gmra.mrb[2].mxu0 %vm39_vm0, %v17_v9 }
   0xd   :  { %309 = vmatmul.mubr.msk.f32.gmra.mrb[2].mxu1 %vm39_vm0, %v25_v10  ;;  %299 = vmatprep.mubr.msk.f32.mxu0 %vm39_vm0, %v18_v11 }
   0xe   :  { %311 = vmatprep.mubr.msk.f32.mxu1 %vm39_vm0, %v26_v12 }
  0x10   :  { %300 = vmatmul.mubr.msk.f32.gmra.mrb[4].mxu0 %vm39_vm0, %v19_v13 }
  0x11   :  { %312 = vmatmul.mubr.msk.f32.gmra.mrb[4].mxu1 %vm39_vm0, %v27_v14  ;;  %302 = vmatprep.mubr.msk.f32.mxu0 %vm39_vm0, %v20_v15 }
  0x12   :  { %314 = vmatprep.mubr.msk.f32.mxu1 %vm39_vm0, %v28_v16 }
  0x14   :  { %303 = vmatmul.mubr.msk.f32.gmra.mrb[6].mxu0 %vm39_vm0, %v21_v17 }
  0x15   :  { %315 = vmatmul.mubr.msk.f32.gmra.mrb[6].mxu1 %vm39_vm0, %v29_v18 }
  0xdb   :  { %v295_v20 = vpop.f32.mrb[0].mxu0 }
  0xdc   :  { %v307_v21 = vpop.f32.mrb[0].mxu1  ;;  %v160_v22 = vadd.f32 %v295_v20, %v254_v19  ;;  %v154_v24 = vpop.f32.mrb[1].mxu0 }
  0xdd   :  { %v200_v23 = vadd.f32 %v307_v21, %v254_v19  ;;  %v194_v25 = vpop.f32.mrb[1].mxu1  ;;  %v155_v26 = vadd.f32 %v254_v19, %v154_v24 }
  0xde   :  { %v195_v27 = vadd.f32 %v254_v19, %v194_v25  ;;  %235 = vst.msk [vmem:[%s483_s3 + $0x8] sm:$0xff] %vm233_vm1, %v160_v22 }
  0xdf   :  { %243 = vst.msk [vmem:[%s483_s3 + $0x48] sm:$0xff] %vm233_vm1, %v200_v23  ;;  %234 = vst.msk [vmem:[%s483_s3] sm:$0xff] %vm233_vm1, %v155_v26  ;;  %v298_v28 = vpop.f32.mrb[2].mxu0 }
  0xe0   :  { %242 = vst.msk [vmem:[%s483_s3 + $0x40] sm:$0xff] %vm233_vm1, %v195_v27  ;;  %v310_v29 = vpop.f32.mrb[2].mxu1  ;;  %v170_v30 = vadd.f32 %v298_v28, %v254_v19  ;;  %v164_v32 = vpop.f32.mrb[3].mxu0 }
  0xe1   :  { %v210_v31 = vadd.f32 %v310_v29, %v254_v19  ;;  %v204_v33 = vpop.f32.mrb[3].mxu1  ;;  %v165_v34 = vadd.f32 %v254_v19, %v164_v32 }
  0xe2   :  { %v205_v35 = vadd.f32 %v254_v19, %v204_v33  ;;  %237 = vst.msk [vmem:[%s483_s3 + $0x18] sm:$0xff] %vm233_vm1, %v170_v30 }
  0xe3   :  { %245 = vst.msk [vmem:[%s483_s3 + $0x58] sm:$0xff] %vm233_vm1, %v210_v31  ;;  %236 = vst.msk [vmem:[%s483_s3 + $0x10] sm:$0xff] %vm233_vm1, %v165_v34  ;;  %v301_v36 = vpop.f32.mrb[4].mxu0 }
  0xe4   :  { %244 = vst.msk [vmem:[%s483_s3 + $0x50] sm:$0xff] %vm233_vm1, %v205_v35  ;;  %v313_v37 = vpop.f32.mrb[4].mxu1  ;;  %v180_v38 = vadd.f32 %v301_v36, %v254_v19  ;;  %v174_v40 = vpop.f32.mrb[5].mxu0 }
  0xe5   :  { %v220_v39 = vadd.f32 %v313_v37, %v254_v19  ;;  %v214_v41 = vpop.f32.mrb[5].mxu1  ;;  %v175_v42 = vadd.f32 %v254_v19, %v174_v40 }
  0xe6   :  { %v215_v43 = vadd.f32 %v254_v19, %v214_v41  ;;  %239 = vst.msk [vmem:[%s483_s3 + $0x28] sm:$0xff] %vm233_vm1, %v180_v38 }
  0xe7   :  { %247 = vst.msk [vmem:[%s483_s3 + $0x68] sm:$0xff] %vm233_vm1, %v220_v39  ;;  %238 = vst.msk [vmem:[%s483_s3 + $0x20] sm:$0xff] %vm233_vm1, %v175_v42  ;;  %v304_v44 = vpop.f32.mrb[6].mxu0 }
  0xe8   :  { %246 = vst.msk [vmem:[%s483_s3 + $0x60] sm:$0xff] %vm233_vm1, %v215_v43  ;;  %v316_v45 = vpop.f32.mrb[6].mxu1  ;;  %v190_v46 = vadd.f32 %v304_v44, %v254_v19  ;;  %v184_v48 = vpop.f32.mrb[7].mxu0 }
  0xe9   :  { %v230_v47 = vadd.f32 %v316_v45, %v254_v19  ;;  %v224_v49 = vpop.f32.mrb[7].mxu1  ;;  %v185_v50 = vadd.f32 %v254_v19, %v184_v48 }
  0xea   :  { %v225_v51 = vadd.f32 %v254_v19, %v224_v49  ;;  %241 = vst.msk [vmem:[%s483_s3 + $0x38] sm:$0xff] %vm233_vm1, %v190_v46 }
  0xeb   :  { %249 = vst.msk [vmem:[%s483_s3 + $0x78] sm:$0xff] %vm233_vm1, %v230_v47  ;;  %240 = vst.msk [vmem:[%s483_s3 + $0x30] sm:$0xff] %vm233_vm1, %v185_v50 }
  0xec   :  { %248 = vst.msk [vmem:[%s483_s3 + $0x70] sm:$0xff] %vm233_vm1, %v225_v51 }

</bundles_post_ra>
